<compile_context>
chip_gen: v7x
topology: tpu7x:2x2x1
jax: 0.10.0
libtpu: 0.0.40
codegen_flags: <defaults>
</compile_context>

<pallas_src>
import functools
import math

import jax
import jax.numpy as jnp
from jax.experimental import pallas as pl
from jax.experimental.pallas import tpu as pltpu


def _round_up(x, m):
    return (x + m - 1) // m * m


def _note_encoder_kernel(ins_ref, rhs_ref, out_ref, *, n_vocab, n_types):
    """One fused matmul: out = [1hot(tok)|1hot(typ)|dur|1] @ [emb*s; temb*s; w; b]."""
    rows = ins_ref.shape[0]
    K = rhs_ref.shape[0]

    tok = ins_ref[:, 0:1]                                  # (rows, 1) int32
    typ = ins_ref[:, 1:2]                                  # (rows, 1) int32
    dur = pltpu.bitcast(ins_ref[:, 2:3], jnp.float32)      # (rows, 1) f32 (bit-packed)

    col = jax.lax.broadcasted_iota(jnp.int32, (rows, K), 1)
    dur_col = n_vocab + n_types          # column carrying the duration value
    one_col = n_vocab + n_types + 1      # column carrying the constant 1 (bias row)

    # One-hot hits for token, type and the bias column (disjoint for in-range indices).
    hit = (col == tok) | (col == (typ + n_vocab)) | (col == one_col)
    lhs = jnp.where(col == dur_col, dur, hit.astype(jnp.float32))
    lhs = lhs.astype(rhs_ref.dtype)      # no-op for f32 tables; enables bf16 MXU path

    out_ref[...] = jnp.dot(lhs, rhs_ref[...],
                           preferred_element_type=jnp.float32).astype(out_ref.dtype)


def note_encoder(note_tokens, note_durs, note_types,
                 emb_w, type_emb_w, dur_w, dur_b,
                 *, row_tile=512, table_dtype=jnp.float32, out_dtype=jnp.float32):
    """note_tokens/note_types: [B, T] int, note_durs: [B, T] f32 -> [B, T, H]."""
    B, T = note_tokens.shape
    V, H = emb_w.shape
    TV = type_emb_w.shape[0]             # 5 in the module
    N = B * T
    scale = math.sqrt(H)

    # ---- Fused RHS table: [emb*sqrt(H) ; type_emb*sqrt(H) ; dur_w ; dur_b ; zero pad]
    K = V + TV + 2
    K_pad = _round_up(K, 128)            # lane-/sublane-friendly contraction dim
    rhs = jnp.zeros((K_pad, H), jnp.float32)
    rhs = rhs.at[:V].set(emb_w.astype(jnp.float32) * scale)
    rhs = rhs.at[V:V + TV].set(type_emb_w.astype(jnp.float32) * scale)
    rhs = rhs.at[V + TV].set(dur_w.reshape(H).astype(jnp.float32))
    rhs = rhs.at[V + TV + 1].set(dur_b.reshape(H).astype(jnp.float32))
    rhs = rhs.astype(table_dtype)        # bf16 here on v6e/v7x if the model tolerates it

    # ---- Row tiling: big tiles, clamped so double-buffered blocks fit scoped VMEM (v7x-safe).
    row_tile = max(8, min(int(row_tile), _round_up(N, 8)))
    row_tile = _round_up(row_tile, 8)

    def _vmem_estimate(rt):
        in_b = 2 * rt * 8 * 4                                    # packed inputs (2 bufs)
        out_b = 2 * rt * H * jnp.dtype(out_dtype).itemsize       # output tile  (2 bufs)
        tbl_b = 2 * K_pad * H * jnp.dtype(table_dtype).itemsize  # fused table
        lhs_b = rt * K_pad * jnp.dtype(table_dtype).itemsize     # in-kernel one-hot LHS
        return in_b + out_b + tbl_b + lhs_b

    while row_tile > 8 and _vmem_estimate(row_tile) > 24 * 1024 * 1024:
        row_tile = max(8, _round_up(row_tile // 2, 8))

    N_pad = _round_up(N, row_tile)

    # ---- Pack tok/typ/dur into one (N_pad, 8) int32 array -> one DMA per grid step.
    tok = note_tokens.reshape(N).astype(jnp.int32)
    typ = note_types.reshape(N).astype(jnp.int32)
    dur_bits = jax.lax.bitcast_convert_type(
        note_durs.reshape(N).astype(jnp.float32), jnp.int32)
    ins = jnp.zeros((N_pad, 8), jnp.int32)
    ins = ins.at[:N, 0].set(tok)
    ins = ins.at[:N, 1].set(typ)
    ins = ins.at[:N, 2].set(dur_bits)

    grid = (N_pad // row_tile,)
    kernel = functools.partial(_note_encoder_kernel, n_vocab=V, n_types=TV)

    out = pl.pallas_call(
        kernel,
        out_shape=jax.ShapeDtypeStruct((N_pad, H), out_dtype),
        grid_spec=pltpu.PrefetchScalarGridSpec(
            num_scalar_prefetch=0,
            grid=grid,
            in_specs=[
                # packed (tok, typ, dur_bits) rows — single narrow DMA per step
                pl.BlockSpec((row_tile, 8), lambda i: (i, 0)),
                # fused RHS table: constant block index -> fetched once, reused every step
                pl.BlockSpec((K_pad, H), lambda i: (0, 0)),
            ],
            out_specs=pl.BlockSpec((row_tile, H), lambda i: (i, 0)),
        ),
        compiler_params=pltpu.CompilerParams(
            dimension_semantics=("parallel",)),   # shards row tiles across v7x's 2 TCs
    )(ins, rhs)

    return out[:N].reshape(B, T, H)


def _reference(note_tokens, note_durs, note_types, emb_w, type_emb_w, dur_w, dur_b):
    H = emb_w.shape[1]
    x = emb_w[note_tokens] * math.sqrt(H)
    t = type_emb_w[note_types] * math.sqrt(H)
    d = note_durs[..., None] * dur_w.reshape(1, 1, H) + dur_b.reshape(1, 1, H)
    return x + d + t


if __name__ == "__main__":
    # Small synthetic config consistent with the module (H chosen lane-dense).
    n_vocab = 100         # note token vocabulary
    n_types = 5           # fixed by the module (Embedding(5, H))
    H = 128               # hidden_channels
    B, T = 2, 192         # batch, note-sequence length  (N=384 -> exercises pad + 2 grid steps)

    key = jax.random.PRNGKey(0)
    k_emb, k_temb, k_w, k_b, k_tok, k_typ, k_dur = jax.random.split(key, 7)

    # nn.init.normal_(emb.weight, 0.0, H**-0.5) — note it overwrites the padding row too.
    emb_w = jax.random.normal(k_emb, (n_vocab, H), jnp.float32) * (H ** -0.5)
    type_emb_w = jax.random.normal(k_temb, (n_types, H), jnp.float32) * (H ** -0.5)
    # nn.Linear(1, H) default init: U(-1, 1); torch weight shape is (out=H, in=1).
    dur_w = jax.random.uniform(k_w, (H, 1), jnp.float32, -1.0, 1.0)
    dur_b = jax.random.uniform(k_b, (H,), jnp.float32, -1.0, 1.0)

    note_tokens = jax.random.randint(k_tok, (B, T), 0, n_vocab, jnp.int32)
    note_types = jax.random.randint(k_typ, (B, T), 0, n_types, jnp.int32)
    note_durs = jax.random.uniform(k_dur, (B, T), jnp.float32, 0.0, 4.0)

    out = note_encoder(note_tokens, note_durs, note_types,
                       emb_w, type_emb_w, dur_w, dur_b, row_tile=256)
    out = jax.block_until_ready(out)

    ref = _reference(note_tokens, note_durs, note_types,
                     emb_w, type_emb_w, dur_w, dur_b)
    assert out.shape == (B, T, H)
    assert jnp.allclose(out, ref, atol=1e-5, rtol=1e-5), "mismatch vs reference"

    print("KERNEL_OK")
</pallas_src>

<mosaic_0001>
module attributes {stable_mosaic.version = 11 : i64} {
  func.func @_note_encoder_kernel(%arg0: i32, %arg1: memref<256x8xi32, #tpu.memory_space<vmem>>, %arg2: memref<128x128xf32, #tpu.memory_space<vmem>>, %arg3: memref<256x128xf32, #tpu.memory_space<vmem>>) attributes {dimension_semantics = [#tpu.dimension_semantics<parallel>], iteration_bounds = array<i64: 2>, scalar_prefetch = 0 : i64, scratch_operands = 0 : i64, tpu.core_type = #tpu.core_type<tc>, window_params = [{transform_indices = @transform_0, window_bounds = array<i64: 256, 8>}, {pipeline_mode = #tpu.pipeline_mode<synchronous>, transform_indices = @transform_1, window_bounds = array<i64: 128, 128>}, {transform_indices = @transform_2, window_bounds = array<i64: 256, 128>}]} {
    %c0 = arith.constant 0 : index
    %c0_0 = arith.constant 0 : index
    %0 = vector.load %arg1[%c0, %c0_0] : memref<256x8xi32, #tpu.memory_space<vmem>>, vector<256x1xi32>
    %c0_1 = arith.constant 0 : index
    %c1 = arith.constant 1 : index
    %1 = vector.load %arg1[%c0_1, %c1] : memref<256x8xi32, #tpu.memory_space<vmem>>, vector<256x1xi32>
    %c0_2 = arith.constant 0 : index
    %c2 = arith.constant 2 : index
    %2 = vector.load %arg1[%c0_2, %c2] : memref<256x8xi32, #tpu.memory_space<vmem>>, vector<256x1xi32>
    %3 = tpu.bitcast %2 : vector<256x1xi32> -> vector<256x1xf32>
    %4 = tpu.iota {dimensions = array<i32: 1>} : vector<256x128xi32>
    %5 = vector.broadcast %0 : vector<256x1xi32> to vector<256x128xi32>
    %6 = arith.cmpi eq, %4, %5 : vector<256x128xi32>
    %c100_i32 = arith.constant 100 : i32
    %7 = vector.broadcast %c100_i32 : i32 to vector<256x1xi32>
    %8 = arith.addi %1, %7 : vector<256x1xi32>
    %9 = vector.broadcast %8 : vector<256x1xi32> to vector<256x128xi32>
    %10 = arith.cmpi eq, %4, %9 : vector<256x128xi32>
    %11 = arith.ori %6, %10 : vector<256x128xi1>
    %c106_i32 = arith.constant 106 : i32
    %12 = vector.broadcast %c106_i32 : i32 to vector<256x128xi32>
    %13 = arith.cmpi eq, %4, %12 : vector<256x128xi32>
    %14 = arith.ori %11, %13 : vector<256x128xi1>
    %c105_i32 = arith.constant 105 : i32
    %15 = vector.broadcast %c105_i32 : i32 to vector<256x128xi32>
    %16 = arith.cmpi eq, %4, %15 : vector<256x128xi32>
    %17 = arith.extui %14 : vector<256x128xi1> to vector<256x128xi32>
    %18 = arith.sitofp %17 : vector<256x128xi32> to vector<256x128xf32>
    %19 = vector.shape_cast %3 : vector<256x1xf32> to vector<256x1xf32>
    %20 = vector.broadcast %19 : vector<256x1xf32> to vector<256x128xf32>
    %21 = arith.select %16, %20, %18 : vector<256x128xi1>, vector<256x128xf32>
    %c0_3 = arith.constant 0 : index
    %c0_4 = arith.constant 0 : index
    %22 = vector.load %arg2[%c0_3, %c0_4] : memref<128x128xf32, #tpu.memory_space<vmem>>, vector<128x128xf32>
    %cst = arith.constant dense<0.000000e+00> : vector<256x128xf32>
    %23 = tpu.matmul %21, %22, %cst {dimension_numbers = #tpu.dot_dimension_numbers<[1], [0], [0], [1], [0, 0, 1, 1], [], []>} : vector<256x128xf32>, vector<128x128xf32>, vector<256x128xf32> -> vector<256x128xf32>
    %c0_5 = arith.constant 0 : index
    %c0_6 = arith.constant 0 : index
    %24 = vector.load %arg3[%c0_5, %c0_6] : memref<256x128xf32, #tpu.memory_space<vmem>>, vector<256x128xf32>
    tpu.vector_store %arg3[%c0_5, %c0_6], %23 {strides = array<i32>} : memref<256x128xf32, #tpu.memory_space<vmem>>, vector<256x128xf32>,
    return
  }
  func.func @transform_0(%arg0: i32) -> (i32, i32) {
    %c0_i32 = arith.constant 0 : i32
    %c0_i32_0 = arith.constant 0 : i32
    return %arg0, %c0_i32 : i32, i32
  }
  func.func @transform_1(%arg0: i32) -> (i32, i32) {
    %c0_i32 = arith.constant 0 : i32
    %c0_i32_0 = arith.constant 0 : i32
    %c0_i32_1 = arith.constant 0 : i32
    return %c0_i32, %c0_i32_0 : i32, i32
  }
  func.func @transform_2(%arg0: i32) -> (i32, i32) {
    %c0_i32 = arith.constant 0 : i32
    %c0_i32_0 = arith.constant 0 : i32
    return %arg0, %c0_i32 : i32, i32
  }
}

</mosaic_0001>

<bundles_post_ra>
// kernel: tpu_custom_call.1
= control target key start
LH: loop header
LB: loop body
LE: loop exit
PB: predicated region body
PF: predicated region fallthrough
CT: control target
= control target key end

     0   :  { %7 = vsyncpa [#allocation3], 0  ;;  %s2341_s0 = inlined_call_operand.vmem [shape: s32[512,8], index: 0, kind: input, shape index: {}]   ;;  %s2342_s1 = inlined_call_operand.vmem [shape: f32[128,128], index: 1, kind: input, shape index: {}]   ;;  %s2343_s2 = inlined_call_operand.hbm [shape: f32[512,128], index: 2, kind: output, shape index: {}]  }
   0x1   :  { %9 = vsyncpa [#allocation3 + $0x1], 0  ;;  %s1579_s9 = smov 0   ;;  %s1581_s10 = smov 0  }
   0x2   :  { %s1583_s11 = smov 0   ;;  %s1585_s12 = smov 0  }
   0x3 LB: > { %s1600_s13 = sadd.s32 4294967295, %s1555_s12   ;;  %s1106_s14 = sadd.s32 4294967294, %s1555_s12   ;;  %s1555_s12 = sphi %s1585_s12, %s2355_s12   ;;  %s1551_s11 = sphi %s1583_s11, %s2354_s11   ;;  %s1547_s10 = sphi %s1581_s10, %s2353_s10   ;;  %s1543_s9 = sphi %s1579_s9, %s2352_s9  }
   0x4   : > { %s1604_s15 = sadd.s32 1, %s1555_s12   ;;  %s69_s16 = sadd.s32 1, %s1551_s11 }
   0x5   : > { %s66_s17 = ssub.s32 %s1555_s12, %s1604_s15  ;;  %p79_p0 = scmp.ne.s32.totalorder %s1551_s11, %s1547_s10 }
   0x6   : > { %p67_p1 = scmp.eq.s32.totalorder %s66_s17, 0  ;;  %p80_p2 = scmp.eq.s32.totalorder %s1600_s13, 1 }
   0x7   : > { %p85_p3 = scmp.ne.s32.totalorder %s1547_s10, %s1543_s9  ;;  %p86_p4 = scmp.eq.s32.totalorder %s1106_s14, 1 }
   0x8   : > { %s1615_s18 = scalar_select %p67_p1, %s1551_s11, %s69_s16  }
   0x9   : > { %p1617_p5 = por %p80_p2, %p79_p0  ;;  %p1621_p6 = por %p86_p4, %p85_p3 }
   0xa   : > { %p1109_p7 = scmp.ge.s32.totalorder %s1555_s12, 1  ;;  %p116_p8 = scmp.lt.s32.totalorder %s1555_s12, 3 }
   0xc   : > { %p117_p9 = pnand %p1109_p7, %p116_p8 }
   0xd   : > { %s1111_s21 = sshll.u32 (!%p117_p9), %s1600_s13, 5  ;;  %v1557_v0 = vmov (!%p117_p9), 0   ;;  %v1558_v23 = vmov (!%p117_p9), 1   ;;  %v1559_v24 = vmov (!%p117_p9), 2   ;;  %v757_v28 = vld [vmem:[%s2342_s1] sm:$0xff] (!%p117_p9)  ;;  %v758_v29 = vld [vmem:[%s2342_s1 + $0x8] sm:$0xff] (!%p117_p9) }
   0xe   : > { %120 = sbr.rel (%p117_p9) target bundleno = 605 (0x25d), region = 28  ;;  %1373 = vset.pattern.permute.xlu1 (!%p117_p9), %v1557_v0  ;;  %1372 = vset.pattern.permute.xlu0 (!%p117_p9), %v1557_v0  ;;  %p139_p10 = scmp.lt.s32.totalorder (!%p117_p9), %s1111_s21, 63  ;;  %v1279_v31 = vpack.c.bf16 (!%p117_p9), %v758_v29, %v757_v28  ;;  %v759_v33 = vld [vmem:[%s2342_s1 + $0x10] sm:$0xff] (!%p117_p9)  ;;  %v760_v34 = vld [vmem:[%s2342_s1 + $0x18] sm:$0xff] (!%p117_p9)  ;;  %v761_v38 = vld [vmem:[%s2342_s1 + $0x20] sm:$0xff] (!%p117_p9) }
   0xf   : > { %v1283_v36 = vpack.c.bf16 (!%p117_p9), %v760_v34, %v759_v33  ;;  %v762_v39 = vld [vmem:[%s2342_s1 + $0x28] sm:$0xff] (!%p117_p9)  ;;  %v763_v44 = vld [vmem:[%s2342_s1 + $0x30] sm:$0xff] (!%p117_p9)  ;;  %v764_v45 = vld [vmem:[%s2342_s1 + $0x38] sm:$0xff] (!%p117_p9)  ;;  %s1150_s23 = sshll.u32 (!%p117_p9), %s1600_s13, 12  ;;  %s1561_s30 = smov (!%p117_p9), [#allocation2]  }
  0x10   : > { %1280 = vmatprep.subr.bf16.mxu0 (!%p117_p9), %v1279_v31  ;;  %1311 = vmatprep.subr.bf16.mxu1 (!%p117_p9), %v1279_v31  ;;  %v1287_v41 = vpack.c.bf16 (!%p117_p9), %v762_v39, %v761_v38  ;;  %v1291_v47 = vpack.c.bf16 (!%p117_p9), %v764_v45, %v763_v44  ;;  %v765_v50 = vld [vmem:[%s2342_s1 + $0x40] sm:$0xff] (!%p117_p9)  ;;  %v766_v51 = vld [vmem:[%s2342_s1 + $0x48] sm:$0xff] (!%p117_p9)  ;;  %v767_v56 = vld [vmem:[%s2342_s1 + $0x50] sm:$0xff] (!%p117_p9)  ;;  %s2290_s28 = scalar_lea.hbm (!%p117_p9), %s2343_s2, %s1150_s23  ;;  %s1497_s3 = sshll.u32 (!%p117_p9), %s1561_s30, 4  ;;  %s1498_s3 = int_to_ptr.vmem [resolvable:$false] %s1497_s3 }
  0x11   : > { %1282 = vmatpush3.bf16.msra.mxu0 (!%p117_p9), %v1279_v31  ;;  %1319 = vmatpush3.bf16.msra.mxu1 (!%p117_p9), %v1279_v31  ;;  %v1295_v53 = vpack.c.bf16 (!%p117_p9), %v766_v51, %v765_v50  ;;  %v768_v57 = vld [vmem:[%s2342_s1 + $0x58] sm:$0xff] (!%p117_p9)  ;;  %v769_v59 = vld [vmem:[%s2342_s1 + $0x60] sm:$0xff] (!%p117_p9)  ;;  %v770_v60 = vld [vmem:[%s2342_s1 + $0x68] sm:$0xff] (!%p117_p9)  ;;  %s1499_s4 = scalar_lea.vmem (!%p117_p9), %s1498_s3, 8192 }
  0x12   : > { %1284 = vmatprep.subr.bf16.mxu0 (!%p117_p9), %v1283_v36  ;;  %1312 = vmatprep.subr.bf16.mxu1 (!%p117_p9), %v1283_v36  ;;  %v1299_v58 = vpack.c.bf16 (!%p117_p9), %v768_v57, %v767_v56  ;;  %v1303_v63 = vpack.c.bf16 (!%p117_p9), %v770_v60, %v769_v59 }
  0x15   : > { %s2357_s21 = smov (!%p139_p10, %s1111_s21), 63  ;;  %1286 = vmatpush3.bf16.msra.mxu0 %v1283_v36  ;;  %1320 = vmatpush3.bf16.msra.mxu1 %v1283_v36 }
  0x16   : > { %s1112_s22 = sshll.u32 %s2357_s21, 3  ;;  %1288 = vmatprep.subr.bf16.mxu0 %v1287_v41  ;;  %1313 = vmatprep.subr.bf16.mxu1 %v1287_v41 }
  0x17   : > { %s1633_s25 = scalar_lea.vmem %s2341_s0, %s1112_s22 }
  0x18   : > { %v1636_v1 = vld [vmem:[%s1633_s25 + $0x10] sm:$0xff]  ;;  %v1639_v2 = vld [vmem:[%s1633_s25] sm:$0xff]  ;;  %v1644_v3 = vld [vmem:[%s1633_s25 + $0x18] sm:$0xff] }
  0x19   : > { %186 = vperm.xlu1 %1373, %v1636_v1   ;;  %180 = vperm.xlu0 %1372, %v1639_v2   ;;  %v1647_v4 = vld [vmem:[%s1633_s25 + $0x8] sm:$0xff]  ;;  %v1655_v6 = vld [vmem:[%s1633_s25 + $0x20] sm:$0xff]  ;;  %v1660_v7 = vld [vmem:[%s1633_s25 + $0x38] sm:$0xff]  ;;  %v310_v54 = vadd.s32 100, %v1644_v3  ;;  %v307_v62 = vadd.s32 100, %v1639_v2 }
  0x1a   : > { %v1652_v5 = vld [vmem:[%s1633_s25 + $0x28] sm:$0xff]  ;;  %v1663_v8 = vld [vmem:[%s1633_s25 + $0x30] sm:$0xff]  ;;  %v1671_v10 = vld [vmem:[%s1633_s25 + $0x40] sm:$0xff]  ;;  %v308_v26 = vadd.s32 100, %v1647_v4  ;;  %1290 = vmatpush3.bf16.msra.mxu0 %v1287_v41  ;;  %1321 = vmatpush3.bf16.msra.mxu1 %v1287_v41 }
  0x1b   : > { %v1668_v9 = vld [vmem:[%s1633_s25 + $0x48] sm:$0xff]  ;;  %v1676_v11 = vld [vmem:[%s1633_s25 + $0x58] sm:$0xff]  ;;  %v1679_v12 = vld [vmem:[%s1633_s25 + $0x50] sm:$0xff]  ;;  %1292 = vmatprep.subr.bf16.mxu0 %v1291_v47  ;;  %1314 = vmatprep.subr.bf16.mxu1 %v1291_v47  ;;  %v313_v29 = vadd.s32 100, %v1663_v8 }
  0x1c   : > { %v1684_v13 = vld [vmem:[%s1633_s25 + $0x68] sm:$0xff]  ;;  %v1687_v14 = vld [vmem:[%s1633_s25 + $0x60] sm:$0xff]  ;;  %v1692_v15 = vld [vmem:[%s1633_s25 + $0x78] sm:$0xff] }
  0x1d   : > { %189 = vperm.xlu1 %1373, %v1644_v3   ;;  %183 = vperm.xlu0 %1372, %v1647_v4   ;;  %v1695_v16 = vld [vmem:[%s1633_s25 + $0x70] sm:$0xff]  ;;  %v1700_v17 = vld [vmem:[%s1633_s25 + $0x88] sm:$0xff]  ;;  %v161_v18 = vld [vmem:[%s1633_s25 + $0x80] sm:$0xff]  ;;  %v319_v36 = vadd.s32 100, %v1687_v14 }
  0x1e   : > { %v323_v19 = vadd.s32 100, %v161_v18  ;;  %v1378_v20 = vpack.i.bf16 %v161_v18, %v1639_v2  ;;  %v163_v21 = vld [vmem:[%s1633_s25 + $0x90] sm:$0xff]  ;;  %v1707_v22 = vld [vmem:[%s1633_s25 + $0xc8] sm:$0xff]  ;;  %v1722_v30 = vld [vmem:[%s1633_s25 + $0xa0] sm:$0xff]  ;;  %1294 = vmatpush3.bf16.msra.mxu0 %v1291_v47  ;;  %1322 = vmatpush3.bf16.msra.mxu1 %v1291_v47  ;;  %v1386_v61 = vpack.i.bf16 %v1700_v17, %v1647_v4  ;;  %v324_v2 = vadd.s32 100, %v1700_v17 }
  0x1f   : > { %v1446_v25 = vpack.i.bf16 %v1707_v22, %v1668_v9  ;;  %v1393_v27 = vpack.i.bf16 %v163_v21, %v1636_v1  ;;  %v1408_v32 = vpack.i.bf16 %v1722_v30, %v1655_v6  ;;  %v1733_v35 = vld [vmem:[%s1633_s25 + $0xb0] sm:$0xff]  ;;  %v1745_v40 = vld [vmem:[%s1633_s25 + $0xc0] sm:$0xff]  ;;  %v325_v42 = vadd.s32 100, %v163_v21  ;;  %v1760_v48 = vld [vmem:[%s1633_s25 + $0x98] sm:$0xff]  ;;  %1296 = vmatprep.subr.bf16.mxu0 %v1295_v53  ;;  %1315 = vmatprep.subr.bf16.mxu1 %v1295_v53 }
  0x20   : > { %v1423_v37 = vpack.i.bf16 %v1733_v35, %v1663_v8  ;;  %v1438_v43 = vpack.i.bf16 %v1745_v40, %v1671_v10  ;;  %v1757_v46 = vld [vmem:[%s1633_s25 + $0xd0] sm:$0xff]  ;;  %v1771_v52 = vld [vmem:[%s1633_s25 + $0xe0] sm:$0xff]  ;;  %v772_v4 = vld [vmem:[%s2342_s1 + $0x78] sm:$0xff]  ;;  %v329_v33 = vadd.s32 100, %v1733_v35  ;;  %v321_v39 = vadd.s32 100, %v1695_v16 }
  0x21   : > { %195 = vperm.xlu1 %1373, %v1652_v5   ;;  %192 = vperm.xlu0 %1372, %v1655_v6   ;;  %v1453_v49 = vpack.i.bf16 %v1757_v46, %v1679_v12  ;;  %v1468_v55 = vpack.i.bf16 %v1771_v52, %v1687_v14  ;;  %v168_v31 = vld [vmem:[%s1633_s25 + $0xb8] sm:$0xff]  ;;  %v316_v47 = vadd.s32 100, %v1668_v9 }
  0x22   : > { %1298 = vmatpush3.bf16.msra.mxu0 %v1295_v53  ;;  %1323 = vmatpush3.bf16.msra.mxu1 %v1295_v53  ;;  %v1827_v34 = vld [vmem:[%s1633_s25 + $0xd8] sm:$0xff]  ;;  %v1431_v50 = vpack.i.bf16 %v168_v31, %v1660_v7 }
  0x23   : > { %1300 = vmatprep.subr.bf16.mxu0 %v1299_v58  ;;  %1316 = vmatprep.subr.bf16.mxu1 %v1299_v58  ;;  %v1842_v41 = vld [vmem:[%s1633_s25 + $0xf8] sm:$0xff] }
  0x24   : > { %v1488_v44 = vpack.i.bf16 %v1842_v41, %v1692_v15 }
  0x25   : > { %201 = vperm.xlu1 %1373, %v1660_v7   ;;  %198 = vperm.xlu0 %1372, %v1663_v8   ;;  %v317_v8 = vadd.s32 100, %v1679_v12 }
  0x26   : > { %1302 = vmatpush3.bf16.msra.mxu0 %v1299_v58  ;;  %1324 = vmatpush3.bf16.msra.mxu1 %v1299_v58 }
  0x27   : > { %1304 = vmatprep.subr.bf16.mxu0 %v1303_v63  ;;  %1317 = vmatprep.subr.bf16.mxu1 %v1303_v63 }
  0x29   : > { %207 = vperm.xlu1 %1373, %v1668_v9   ;;  %204 = vperm.xlu0 %1372, %v1671_v10  }
  0x2a   : > { %1306 = vmatpush3.bf16.msra.mxu0 %v1303_v63  ;;  %1325 = vmatpush3.bf16.msra.mxu1 %v1303_v63  ;;  %v318_v63 = vadd.s32 100, %v1676_v11 }
  0x2d   : > { %213 = vperm.xlu1 %1373, %v1676_v11   ;;  %210 = vperm.xlu0 %1372, %v1679_v12  }
  0x31   : > { %219 = vperm.xlu1 %1373, %v1684_v13   ;;  %216 = vperm.xlu0 %1372, %v1687_v14   ;;  %v331_v14 = vadd.s32 100, %v1745_v40 }
  0x35   : > { %225 = vperm.xlu1 %1373, %v1692_v15   ;;  %222 = vperm.xlu0 %1372, %v1695_v16  }
  0x39   : > { %231 = vperm.xlu1 %1373, %v1700_v17   ;;  %228 = vperm.xlu0 %1372, %v161_v18   ;;  %v771_v18 = vld [vmem:[%s2342_s1 + $0x70] sm:$0xff]  ;;  %v326_v17 = vadd.s32 100, %v1760_v48 }
  0x3d   : > { %1374 = vset.pattern.permute.xlu1 %v1558_v23  ;;  %1377 = vset.pattern.permute.xlu0 %v1559_v24 }
  0x3e   : > { %388 = vperm.xlu1 %1374, %v323_v19   ;;  %1379 = vperm.xlu0 %1377, %v1378_v20   ;;  %v1307_v19 = vpack.c.bf16 %v772_v4, %v771_v18  ;;  %v309_v20 = vadd.s32 100, %v1636_v1  ;;  %v312_v1 = vadd.s32 100, %v1652_v5 }
  0x40   : > { %1308 = vmatprep.subr.bf16.mxu0 %v1307_v19  ;;  %1318 = vmatprep.subr.bf16.mxu1 %v1307_v19 }
  0x41   : > { %1310 = vmatpush3.bf16.msra.mxu0 %v1307_v19  ;;  %1326 = vmatpush3.bf16.msra.mxu1 %v1307_v19 }
  0x42   : > { %343 = vperm.xlu1 %1374, %v308_v26   ;;  %1394 = vperm.xlu0 %1377, %v1393_v27   ;;  %v166_v26 = vld [vmem:[%s1633_s25 + $0xa8] sm:$0xff]  ;;  %v311_v27 = vadd.s32 100, %v1655_v6  ;;  %v330_v6 = vadd.s32 100, %v168_v31 }
  0x43   : > { %v328_v28 = vadd.s32 100, %v166_v26  ;;  %v1416_v12 = vpack.i.bf16 %v166_v26, %v1652_v5  ;;  %v338_v5 = vadd.s32 100, %v1842_v41 }
  0x46   : > { %1375 = vset.pattern.permute.xlu1 %v1557_v0  ;;  %1409 = vperm.xlu0 %1377, %v1408_v32   ;;  %v315_v32 = vadd.s32 100, %v1671_v10  ;;  %v334_v10 = vadd.s32 100, %v1827_v34 }
  0x47   : > { %234 = vperm.xlu1 %1375, %v163_v21   ;;  %v327_v21 = vadd.s32 100, %v1722_v30 }
  0x4a   : > { %1424 = vperm.xlu0 %1377, %v1423_v37   ;;  %v1835_v37 = vld [vmem:[%s1633_s25 + $0xe8] sm:$0xff] }
  0x4b   : > { %1376 = vset.pattern.permute.xlu1 %v1558_v23  ;;  %v336_v38 = vadd.s32 100, %v1835_v37 }
  0x4c   : > { %394 = vperm.xlu1 %1376, %v325_v42  }
  0x4e   : > { %1439 = vperm.xlu0 %1377, %v1438_v43  }
  0x50   : > { %1383 = vset.pattern.permute.xlu1 %v1557_v0 }
  0x51   : > { %237 = vperm.xlu1 %1383, %v1760_v48  }
  0x52   : > { %1454 = vperm.xlu0 %1377, %v1453_v49  }
  0x55   : > { %1384 = vset.pattern.permute.xlu1 %v1558_v23 }
  0x56   : > { %349 = vperm.xlu1 %1384, %v310_v54   ;;  %1469 = vperm.xlu0 %1377, %v1468_v55  }
  0x5a   : > { %1385 = vset.pattern.permute.xlu1 %v1559_v24  ;;  %1473 = vset.pattern.permute.xlu0 %v1558_v23 }
  0x5b   : > { %1387 = vperm.xlu1 %1385, %v1386_v61   ;;  %340 = vperm.xlu0 %1473, %v307_v62   ;;  %v177_v62 = vlaneseq }
  0x5d   : > { %v1900_v4 = vand.u32 127, %v177_v62 }
  0x5f   : > { %1391 = vset.pattern.permute.xlu1 %v1557_v0  ;;  %391 = vperm.xlu0 %1473, %v324_v2   ;;  %vm499_vm1 = vcmp.eq.s32.totalorder %v1900_v4, 106  ;;  %vm532_vm4 = vcmp.eq.s32.totalorder %v1900_v4, 105 }
  0x60   : > { %240 = vperm.xlu1 %1391, %v1722_v30   ;;  %v1401_v30 = vpack.i.bf16 %v1760_v48, %v1644_v3  ;;  %v332_v3 = vadd.s32 100, %v1707_v22 }
  0x63   : > { %346 = vperm.xlu0 %1473, %v309_v20  }
  0x64   : > { %1392 = vset.pattern.permute.xlu1 %v1558_v23 }
  0x65   : > { %400 = vperm.xlu1 %1392, %v327_v21  }
  0x67   : > { %397 = vperm.xlu0 %1473, %v326_v17  }
  0x69   : > { %1398 = vset.pattern.permute.xlu1 %v1557_v0 }
  0x6a   : > { %243 = vperm.xlu1 %1398, %v166_v26   ;;  %v1560_v26 = vmov 0.0  }
  0x6b   : > { %352 = vperm.xlu0 %1473, %v311_v27  }
  0x6e   : > { %1399 = vset.pattern.permute.xlu1 %v1558_v23 }
  0x6f   : > { %355 = vperm.xlu1 %1399, %v312_v1   ;;  %403 = vperm.xlu0 %1473, %v328_v28  }
  0x73   : > { %1400 = vset.pattern.permute.xlu1 %v1559_v24  ;;  %358 = vperm.xlu0 %1473, %v313_v29  }
  0x74   : > { %1402 = vperm.xlu1 %1400, %v1401_v30  }
  0x77   : > { %409 = vperm.xlu0 %1473, %v330_v6  }
  0x78   : > { %1406 = vset.pattern.permute.xlu1 %v1557_v0 }
  0x79   : > { %246 = vperm.xlu1 %1406, %v1733_v35   ;;  %v314_v35 = vadd.s32 100, %v1660_v7  ;;  %v333_v7 = vadd.s32 100, %v1757_v46 }
  0x7b   : > { %364 = vperm.xlu0 %1473, %v315_v32  }
  0x7d   : > { %1407 = vset.pattern.permute.xlu1 %v1558_v23 }
  0x7e   : > { %406 = vperm.xlu1 %1407, %v329_v33  }
  0x7f   : > { %415 = vperm.xlu0 %1473, %v332_v3  }
  0x82   : > { %1413 = vset.pattern.permute.xlu1 %v1557_v0 }
  0x83   : > { %249 = vperm.xlu1 %1413, %v168_v31   ;;  %370 = vperm.xlu0 %1473, %v317_v8   ;;  %v320_v31 = vadd.s32 100, %v1684_v13 }
  0x87   : > { %1414 = vset.pattern.permute.xlu1 %v1558_v23  ;;  %421 = vperm.xlu0 %1473, %v334_v10   ;;  %v1959_v10 = vld [vmem:[%s1633_s25 + $0xf0] sm:$0xff]  ;;  %s135_s25 = sand.u32 1, %s1547_s10  }
  0x88   : > { %361 = vperm.xlu1 %1414, %v314_v35   ;;  %s1110_s21 = sshll.u32 %s135_s25, 8  ;;  %s2300_s13 = scalar_lea.sflag [#allocation3], %s135_s25 }
  0x89   : > { %s2255_s22 = scalar_lea.vmem [#allocation2], %s1110_s21 }
  0x8a   : > { %s1044_s24 = sshll.u32 %s2255_s22, 4  ;;  %s2292_s24 = int_to_ptr.vmem [resolvable:$true] %s1044_s24 }
  0x8b   : > { %376 = vperm.xlu0 %1473, %v319_v36   ;;  %s1493_s29 = scalar_lea.vmem %s2292_s24, 4096  ;;  %p1500_p0 = scmp.lt.s32.totalorder %s2292_s24, %s1498_s3 }
  0x8c   : > { %1415 = vset.pattern.permute.xlu1 %v1559_v24  ;;  %p1494_p11 = scmp.ne.s32.totalorder %s2292_s24, %s1493_s29  ;;  %p1501_p1 = scmp.lt.s32.totalorder %s1499_s4, %s1493_s29 }
  0x8d   : > { %1417 = vperm.xlu1 %1415, %v1416_v12  }
  0x8e   : > { %p1495_p12 = pnand %p1494_p11, %p1617_p5  ;;  %p1502_p2 = por %p1501_p1, %p1500_p0 }
  0x8f   : > { %427 = vperm.xlu0 %1473, %v336_v38  }
  0x90   : > { %p1496_p13 = pneg %p1495_p12 }
  0x91   : > { %1421 = vset.pattern.permute.xlu1 %v1557_v0 }
  0x92   : > { %252 = vperm.xlu1 %1421, %v1745_v40   ;;  %p1503_p3 = pnand %p1502_p2, %p1496_p13 }
  0x93   : > { %382 = vperm.xlu0 %1473, %v321_v39   ;;  %v337_v39 = vadd.s32 100, %v1959_v10 }
  0x96   : > { %1422 = vset.pattern.permute.xlu1 %v1558_v23 }
  0x97   : > { %412 = vperm.xlu1 %1422, %v331_v14   ;;  %433 = vperm.xlu0 %1473, %v338_v5  }
  0x98   : > { %v1849_v42 = vpop.permute.xlu1 %186  ;;  %v1851_v43 = vpop.permute.xlu0 %180 }
  0x99   : > { %vm275_vm10 = vcmp.eq.s32.totalorder %v1900_v4, %v1851_v43 }
  0x9b   : > { %1428 = vset.pattern.permute.xlu1 %v1557_v0  ;;  %1487 = vset.pattern.permute.xlu0 %v1559_v24 }
  0x9c   : > { %v1857_v45 = vpop.permute.xlu1 %189  ;;  %255 = vperm.xlu1 %1428, %v1707_v22   ;;  %v1860_v40 = vpop.permute.xlu0 %183  ;;  %1489 = vperm.xlu0 %1487, %v1488_v44   ;;  %v335_v22 = vadd.s32 100, %v1771_v52 }
  0x9d   : > { %vm276_vm6 = vcmp.eq.s32.totalorder %v1900_v4, %v1860_v40 }
  0xa0   : > { %v1863_v48 = vpop.permute.xlu1 %195  ;;  %1429 = vset.pattern.permute.xlu1 %v1558_v23  ;;  %v1866_v49 = vpop.permute.xlu0 %192 }
  0xa1   : > { %367 = vperm.xlu1 %1429, %v316_v47  }
  0xa4   : > { %v1869_v51 = vpop.permute.xlu1 %201  ;;  %v1871_v53 = vpop.permute.xlu0 %198 }
  0xa5   : > { %1430 = vset.pattern.permute.xlu1 %v1559_v24 }
  0xa6   : > { %1432 = vperm.xlu1 %1430, %v1431_v50  }
  0xa8   : > { %v1874_v54 = vpop.permute.xlu1 %207  ;;  %v1876_v55 = vpop.permute.xlu0 %204 }
  0xaa   : > { %1436 = vset.pattern.permute.xlu1 %v1557_v0 }
  0xab   : > { %258 = vperm.xlu1 %1436, %v1757_v46  }
  0xac   : > { %v1880_v56 = vpop.permute.xlu1 %213  ;;  %v1882_v57 = vpop.permute.xlu0 %210 }
  0xaf   : > { %1437 = vset.pattern.permute.xlu1 %v1558_v23 }
  0xb0   : > { %v1886_v58 = vpop.permute.xlu1 %219  ;;  %418 = vperm.xlu1 %1437, %v333_v7   ;;  %v1888_v59 = vpop.permute.xlu0 %216 }
  0xb4   : > { %v1890_v60 = vpop.permute.xlu1 %225  ;;  %1443 = vset.pattern.permute.xlu1 %v1557_v0  ;;  %v1893_v61 = vpop.permute.xlu0 %222 }
  0xb5   : > { %261 = vperm.xlu1 %1443, %v1827_v34  }
  0xb8   : > { %v1897_v18 = vpop.permute.xlu1 %231  ;;  %v229_v46 = vpop.permute.xlu0 %228 }
  0xb9   : > { %1444 = vset.pattern.permute.xlu1 %v1558_v23  ;;  %vm291_vm0 = vcmp.eq.s32.totalorder %v1900_v4, %v229_v46 }
  0xba   : > { %373 = vperm.xlu1 %1444, %v318_v63  }
  0xbd   : > { %v389_v2 = vpop.permute.xlu1 %388  ;;  %v1904_v19 = vpop.permute.xlu0 %1379 }
  0xbe   : > { %vm451_vm2 = vcmp.eq.s32.totalorder %v1900_v4, %v389_v2  ;;  %1445 = vset.pattern.permute.xlu1 %v1559_v24  ;;  %v1382_v20 = vunpack.i.h.bf16 %v1904_v19  ;;  %v1381_v35 = vunpack.i.l.bf16 %v1904_v19 }
  0xbf   : > { %vm483_vm3 = vmor %vm291_vm0, %vm451_vm2  ;;  %1447 = vperm.xlu1 %1445, %v1446_v25  }
  0xc0   : > { %vm516_vm5 = vmor %vm483_vm3, %vm499_vm1  ;;  %vm292_vm3 = vcmp.eq.s32.totalorder %v1900_v4, %v1897_v18 }
  0xc1   : > { %v344_v21 = vpop.permute.xlu1 %343  ;;  %v1915_v17 = vpop.permute.xlu0 %1394  ;;  %v1129_v27 = vsel %vm516_vm5, 1.0, %v1560_v26 }
  0xc2   : > { %v741_v1 = vsel %vm532_vm4, %v1382_v20, %v1129_v27  ;;  %vm436_vm7 = vcmp.eq.s32.totalorder %v1900_v4, %v344_v21  ;;  %v1397_v44 = vunpack.i.h.bf16 %v1915_v17  ;;  %v1396_v63 = vunpack.i.l.bf16 %v1915_v17 }
  0xc3   : > { %1451 = vset.pattern.permute.xlu1 %v1557_v0  ;;  %1255 = vmatprep.mubr.f32.mxu1 %v741_v1  ;;  %vm468_vm8 = vmor %vm276_vm6, %vm436_vm7  ;;  %v322_v21 = vadd.s32 100, %v1692_v15  ;;  %v1477_v15 = vpack.i.bf16 %v1835_v37, %v1684_v13 }
  0xc4   : > { %264 = vperm.xlu1 %1451, %v1771_v52   ;;  %v1461_v52 = vpack.i.bf16 %v1827_v34, %v1676_v11  ;;  %vm1953_vm11 = vmor %vm468_vm8, %vm499_vm1  ;;  %vm277_vm8 = vcmp.eq.s32.totalorder %v1900_v4, %v1849_v42 }
  0xc5   : > { %v1922_v9 = vpop.permute.xlu0 %1409  ;;  %v1114_v14 = vsel %vm1953_vm11, 1.0, %v1560_v26 }
  0xc6   : > { %v235_v25 = vpop.permute.xlu1 %234  ;;  %v1411_v13 = vunpack.i.l.bf16 %v1922_v9 }
  0xc7   : > { %vm293_vm12 = vcmp.eq.s32.totalorder %v1900_v4, %v235_v25 }
  0xc8   : > { %1452 = vset.pattern.permute.xlu1 %v1558_v23 }
  0xc9   : > { %424 = vperm.xlu1 %1452, %v335_v22   ;;  %v1926_v28 = vpop.permute.xlu0 %1424 }
  0xca   : > { %v1426_v1 = vunpack.i.l.bf16 %v1926_v28 }
  0xcb   : > { %v395_v29 = vpop.permute.xlu1 %394 }
  0xcc   : > { %vm453_vm9 = vcmp.eq.s32.totalorder %v1900_v4, %v395_v29 }
  0xcd   : > { %1458 = vset.pattern.permute.xlu1 %v1557_v0  ;;  %v1929_v30 = vpop.permute.xlu0 %1439  ;;  %vm485_vm13 = vmor %vm293_vm12, %vm453_vm9 }
  0xce   : > { %267 = vperm.xlu1 %1458, %v1835_v37   ;;  %vm518_vm2 = vmor %vm485_vm13, %vm499_vm1  ;;  %vm279_vm13 = vcmp.eq.s32.totalorder %v1900_v4, %v1866_v49  ;;  %v1482_v37 = vpack.i.bf16 %v1959_v10, %v1695_v16 }
  0xcf   : > { %v1131_v47 = vsel %vm518_vm2, 1.0, %v1560_v26 }
  0xd0   : > { %v1933_v6 = vpop.permute.xlu1 %237  ;;  %v743_v2 = vsel %vm532_vm4, %v1397_v44, %v1131_v47 }
  0xd1   : > { %v1935_v32 = vpop.permute.xlu0 %1454 }
  0xd2   : > { %1459 = vset.pattern.permute.xlu1 %v1558_v23 }
  0xd3   : > { %379 = vperm.xlu1 %1459, %v320_v31  }
  0xd5   : > { %v1943_v33 = vpop.permute.xlu1 %349  ;;  %v1945_v3 = vpop.permute.xlu0 %1469 }
  0xd6   : > { %vm438_vm12 = vcmp.eq.s32.totalorder %v1900_v4, %v1943_v33 }
  0xd7   : > { %1460 = vset.pattern.permute.xlu1 %v1559_v24 }
  0xd8   : > { %1462 = vperm.xlu1 %1460, %v1461_v52  }
  0xda   : > { %v1388_v11 = vpop.permute.xlu1 %1387  ;;  %v341_v34 = vpop.permute.xlu0 %340 }
  0xdb   : > { %vm435_vm14 = vcmp.eq.s32.totalorder %v1900_v4, %v341_v34  ;;  %v1389_v36 = vunpack.i.l.bf16 %v1388_v11  ;;  %v1390_v50 = vunpack.i.h.bf16 %v1388_v11 }
  0xdc   : > { %vm467_vm15 = vmor %vm275_vm10, %vm435_vm14  ;;  %1466 = vset.pattern.permute.xlu1 %v1557_v0  ;;  %vm278_vm14 = vcmp.eq.s32.totalorder %v1900_v4, %v1857_v45 }
  0xdd   : > { %vm500_vm0 = vmor %vm467_vm15, %vm499_vm1  ;;  %270 = vperm.xlu1 %1466, %v1959_v10   ;;  %v726_v40 = vsel %vm532_vm4, %v1389_v36, %v1114_v14  ;;  %v1441_v36 = vunpack.i.l.bf16 %v1929_v30 }
  0xde   : > { %v392_v12 = vpop.permute.xlu0 %391  ;;  %v1113_v38 = vsel %vm500_vm0, 1.0, %v1560_v26  ;;  %vm470_vm0 = vmor %vm278_vm14, %vm438_vm12  ;;  %vm281_vm12 = vcmp.eq.s32.totalorder %v1900_v4, %v1871_v53 }
  0xdf   : > { %vm452_vm5 = vcmp.eq.s32.totalorder %v1900_v4, %v392_v12  ;;  %v241_v5 = vpop.permute.xlu1 %240  ;;  %v725_v43 = vsel %vm532_vm4, %v1381_v35, %v1113_v38 }
  0xe0   : > { %vm484_vm6 = vmor %vm292_vm3, %vm452_vm5  ;;  %1231 = vmatprep.mubr.f32.mxu0 %v725_v43  ;;  %vm295_vm5 = vcmp.eq.s32.totalorder %v1900_v4, %v241_v5  ;;  %v1456_v43 = vunpack.i.l.bf16 %v1935_v32 }
  0xe1   : > { %vm517_vm7 = vmor %vm484_vm6, %vm499_vm1  ;;  %1467 = vset.pattern.permute.xlu1 %v1558_v23  ;;  %1232 = vmatmul.mubr.f32.vlgmr.msra.gmra.mrb[0].mxu0 %v726_v40 }
  0xe2   : > { %v1130_v7 = vsel %vm517_vm7, 1.0, %v1560_v26  ;;  %430 = vperm.xlu1 %1467, %v337_v39   ;;  %v347_v62 = vpop.permute.xlu0 %346  ;;  %vm294_vm7 = vcmp.eq.s32.totalorder %v1900_v4, %v1933_v6 }
  0xe3   : > { %vm437_vm9 = vcmp.eq.s32.totalorder %v1900_v4, %v347_v62  ;;  %v742_v18 = vsel %vm532_vm4, %v1390_v50, %v1130_v7  ;;  %v1471_v50 = vunpack.i.l.bf16 %v1945_v3  ;;  %v1427_v7 = vunpack.i.h.bf16 %v1926_v28 }
  0xe4   : > { %vm469_vm10 = vmor %vm277_vm8, %vm437_vm9  ;;  %v401_v46 = vpop.permute.xlu1 %400  ;;  %1256 = vmatmul.mubr.f32.vlgmr.msra.gmra.mrb[0].mxu1 %v742_v18 }
  0xe5   : > { %vm502_vm11 = vmor %vm469_vm10, %vm499_vm1  ;;  %1258 = vmatprep.mubr.f32.mxu1 %v743_v2  ;;  %vm455_vm15 = vcmp.eq.s32.totalorder %v1900_v4, %v401_v46 }
  0xe6   : > { %v1115_v19 = vsel %vm502_vm11, 1.0, %v1560_v26  ;;  %1474 = vset.pattern.permute.xlu1 %v1557_v0  ;;  %v398_v42 = vpop.permute.xlu0 %397  ;;  %vm487_vm8 = vmor %vm295_vm5, %vm455_vm15 }
  0xe7   : > { %273 = vperm.xlu1 %1474, %v1842_v41   ;;  %v727_v20 = vsel %vm532_vm4, %v1396_v63, %v1115_v19  ;;  %vm454_vm2 = vcmp.eq.s32.totalorder %v1900_v4, %v398_v42  ;;  %vm2026_vm11 = vmor %vm470_vm0, %vm499_vm1 }
  0xe8   : > { %1234 = vmatprep.mubr.f32.mxu0 %v727_v20  ;;  %vm486_vm9 = vmor %vm294_vm7, %vm454_vm2  ;;  %v1116_v16 = vsel %vm2026_vm11, 1.0, %v1560_v26 }
  0xe9   : > { %v2007_v17 = vpop.permute.xlu1 %243  ;;  %vm519_vm14 = vmor %vm486_vm9, %vm499_vm1 }
  0xea   : > { %v353_v0 = vpop.permute.xlu0 %352  ;;  %v1132_v31 = vsel %vm519_vm14, 1.0, %v1560_v26  ;;  %vm285_vm14 = vcmp.eq.s32.totalorder %v1900_v4, %v1882_v57 }
  0xeb   : > { %vm439_vm3 = vcmp.eq.s32.totalorder %v1900_v4, %v353_v0  ;;  %1475 = vset.pattern.permute.xlu1 %v1558_v23 }
  0xec   : > { %vm471_vm6 = vmor %vm279_vm13, %vm439_vm3  ;;  %385 = vperm.xlu1 %1475, %v322_v21   ;;  %vm283_vm3 = vcmp.eq.s32.totalorder %v1900_v4, %v1876_v55 }
  0xed   : > { %vm504_vm10 = vmor %vm471_vm6, %vm499_vm1 }
  0xee   : > { %v356_v41 = vpop.permute.xlu1 %355  ;;  %v2020_v45 = vpop.permute.xlu0 %403  ;;  %vm520_vm13 = vmor %vm487_vm8, %vm499_vm1  ;;  %v1117_v49 = vsel %vm504_vm10, 1.0, %v1560_v26  ;;  %vm280_vm10 = vcmp.eq.s32.totalorder %v1900_v4, %v1863_v48 }
  0xef   : > { %v1133_v22 = vsel %vm520_vm13, 1.0, %v1560_v26  ;;  %vm440_vm8 = vcmp.eq.s32.totalorder %v1900_v4, %v356_v41 }
  0xf0   : > { %1476 = vset.pattern.permute.xlu1 %v1559_v24  ;;  %v1412_v24 = vunpack.i.h.bf16 %v1922_v9  ;;  %v729_v9 = vsel %vm532_vm4, %v1411_v13, %v1117_v49 }
  0xf1   : > { %1478 = vperm.xlu1 %1476, %v1477_v15  }
  0xf2   : > { %v359_v27 = vpop.permute.xlu0 %358  ;;  %v745_v11 = vsel %vm532_vm4, %v1412_v24, %v1133_v22 }
  0xf3   : > { %vm441_vm15 = vcmp.eq.s32.totalorder %v1900_v4, %v359_v27  ;;  %v1403_v53 = vpop.permute.xlu1 %1402 }
  0xf4   : > { %vm473_vm0 = vmor %vm281_vm12, %vm441_vm15  ;;  %v1405_v25 = vunpack.i.h.bf16 %v1403_v53  ;;  %v1404_v29 = vunpack.i.l.bf16 %v1403_v53  ;;  %vm456_vm15 = vcmp.eq.s32.totalorder %v1900_v4, %v2020_v45  ;;  %v1442_v45 = vunpack.i.h.bf16 %v1929_v30 }
  0xf5   : > { %vm506_vm2 = vmor %vm473_vm0, %vm499_vm1  ;;  %1483 = vperm.xlu1 %1476, %v1482_v37  }
  0xf6   : > { %v1119_v6 = vsel %vm506_vm2, 1.0, %v1560_v26  ;;  %v2054_v52 = vpop.permute.xlu0 %409  ;;  %v728_v33 = vsel %vm532_vm4, %v1404_v29, %v1116_v16  ;;  %v744_v8 = vsel %vm532_vm4, %v1405_v25, %v1132_v31  ;;  %vm472_vm12 = vmor %vm280_vm10, %vm440_vm8 }
  0xf7   : > { %1235 = vmatmul.mubr.f32.gmra.mrb[2].mxu0 %v728_v33  ;;  %1259 = vmatmul.mubr.f32.gmra.mrb[2].mxu1 %v744_v8  ;;  %v731_v34 = vsel %vm532_vm4, %v1426_v1, %v1119_v6 }
  0xf8   : > { %v247_v10 = vpop.permute.xlu1 %246  ;;  %1237 = vmatprep.mubr.f32.mxu0 %v729_v9  ;;  %1261 = vmatprep.mubr.f32.mxu1 %v745_v11 }
  0xf9   : > { %vm297_vm13 = vcmp.eq.s32.totalorder %v1900_v4, %v247_v10 }
  0xfa   : > { %v365_v35 = vpop.permute.xlu0 %364 }
  0xfb   : > { %vm443_vm5 = vcmp.eq.s32.totalorder %v1900_v4, %v365_v35 }
  0xfc   : > { %vm475_vm6 = vmor %vm283_vm3, %vm443_vm5  ;;  %vm296_vm3 = vcmp.eq.s32.totalorder %v1900_v4, %v2007_v17 }
  0xfd   : > { %vm508_vm7 = vmor %vm475_vm6, %vm499_vm1  ;;  %v407_v12 = vpop.permute.xlu1 %406 }
  0xfe   : > { %v1121_v38 = vsel %vm508_vm7, 1.0, %v1560_v26  ;;  %v2071_v39 = vpop.permute.xlu0 %415  ;;  %vm457_vm9 = vcmp.eq.s32.totalorder %v1900_v4, %v407_v12  ;;  %vm488_vm6 = vmor %vm296_vm3, %vm456_vm15 }
  0xff   : > { %v2075_v14 = vsel %vm532_vm4, %v1441_v36, %v1121_v38  ;;  %vm489_vm0 = vmor %vm297_vm13, %vm457_vm9  ;;  %vm287_vm9 = vcmp.eq.s32.totalorder %v1900_v4, %v1888_v59 }
 0x100   : > { %vm505_vm7 = vmor %vm472_vm12, %vm499_vm1 }
 0x101   : > { %vm522_vm8 = vmor %vm489_vm0, %vm499_vm1  ;;  %v1118_v59 = vsel %vm505_vm7, 1.0, %v1560_v26 }
 0x102   : > { %v250_v55 = vpop.permute.xlu1 %249  ;;  %v371_v5 = vpop.permute.xlu0 %370  ;;  %vm521_vm10 = vmor %vm488_vm6, %vm499_vm1  ;;  %v1135_v63 = vsel %vm522_vm8, 1.0, %v1560_v26  ;;  %vm282_vm6 = vcmp.eq.s32.totalorder %v1900_v4, %v1869_v51 }
 0x103   : > { %vm445_vm11 = vcmp.eq.s32.totalorder %v1900_v4, %v371_v5  ;;  %v1134_v2 = vsel %vm521_vm10, 1.0, %v1560_v26  ;;  %v747_v21 = vsel %vm532_vm4, %v1427_v7, %v1135_v63  ;;  %vm298_vm15 = vcmp.eq.s32.totalorder %v1900_v4, %v250_v55 }
 0x104   : > { %vm477_vm2 = vmor %vm285_vm14, %vm445_vm11  ;;  %vm458_vm14 = vcmp.eq.s32.totalorder %v1900_v4, %v2054_v52  ;;  %v1457_v52 = vunpack.i.h.bf16 %v1935_v32  ;;  %v1472_v55 = vunpack.i.h.bf16 %v1945_v3 }
 0x105   : > { %vm510_vm5 = vmor %vm477_vm2, %vm499_vm1 }
 0x106   : > { %v2088_v44 = vpop.permute.xlu0 %421  ;;  %v1123_v40 = vsel %vm510_vm5, 1.0, %v1560_v26  ;;  %vm490_vm3 = vmor %vm298_vm15, %vm458_vm14 }
 0x107   : > { %v362_v48 = vpop.permute.xlu1 %361  ;;  %v2099_v57 = vsel %vm532_vm4, %v1456_v43, %v1123_v40 }
 0x108   : > { %vm442_vm2 = vcmp.eq.s32.totalorder %v1900_v4, %v362_v48 }
 0x109   : > { %vm474_vm8 = vmor %vm282_vm6, %vm442_vm2 }
 0x10a   : > { %v377_v47 = vpop.permute.xlu0 %376 }
 0x10b   : > { %vm447_vm11 = vcmp.eq.s32.totalorder %v1900_v4, %v377_v47 }
 0x10c   : > { %vm479_vm12 = vmor %vm287_vm9, %vm447_vm11  ;;  %v1418_v62 = vpop.permute.xlu1 %1417 }
 0x10d   : > { %vm512_vm13 = vmor %vm479_vm12, %vm499_vm1  ;;  %v1420_v18 = vunpack.i.h.bf16 %v1418_v62  ;;  %v1419_v46 = vunpack.i.l.bf16 %v1418_v62  ;;  %vm460_vm12 = vcmp.eq.s32.totalorder %v1900_v4, %v2071_v39 }
 0x10e   : > { %v1125_v19 = vsel %vm512_vm13, 1.0, %v1560_v26  ;;  %vm523_vm9 = vmor %vm490_vm3, %vm499_vm1  ;;  %vm284_vm3 = vcmp.eq.s32.totalorder %v1900_v4, %v1874_v54  ;;  %v428_v40 = vpop.permute.xlu0 %427 }
 0x10f   : > { %v730_v42 = vsel %vm532_vm4, %v1419_v46, %v1118_v59  ;;  %v746_v28 = vsel %vm532_vm4, %v1420_v18, %v1134_v2  ;;  %v2122_v20 = vsel %vm532_vm4, %v1471_v50, %v1125_v19  ;;  %vm507_vm11 = vmor %vm474_vm8, %vm499_vm1  ;;  %v1136_v51 = vsel %vm523_vm9, 1.0, %v1560_v26 }
 0x110   : > { %1238 = vmatmul.mubr.f32.gmra.mrb[4].mxu0 %v730_v42  ;;  %1262 = vmatmul.mubr.f32.gmra.mrb[4].mxu1 %v746_v28  ;;  %v1120_v27 = vsel %vm507_vm11, 1.0, %v1560_v26 }
 0x111   : > { %v253_v17 = vpop.permute.xlu1 %252  ;;  %1240 = vmatprep.mubr.f32.mxu0 %v731_v34  ;;  %1264 = vmatprep.mubr.f32.mxu1 %v747_v21 }
 0x112   : > { %vm299_vm5 = vcmp.eq.s32.totalorder %v1900_v4, %v253_v17  ;;  %v383_v47 = vpop.permute.xlu0 %382 }
 0x116   : > { %v413_v0 = vpop.permute.xlu1 %412  ;;  %v434_v7 = vpop.permute.xlu0 %433 }
 0x117   : > { %vm459_vm0 = vcmp.eq.s32.totalorder %v1900_v4, %v413_v0 }
 0x118   : > { %vm491_vm7 = vmor %vm299_vm5, %vm459_vm0 }
 0x119   : > { %vm524_vm10 = vmor %vm491_vm7, %vm499_vm1 }
 0x11a   : > { %v1137_v13 = vsel %vm524_vm10, 1.0, %v1560_v26  ;;  %vm462_vm10 = vcmp.eq.s32.totalorder %v1900_v4, %v2088_v44 }
 0x11b   : > { %v256_v15 = vpop.permute.xlu1 %255  ;;  %v749_v30 = vsel %vm532_vm4, %v1442_v45, %v1137_v13  ;;  %v1490_v63 = vpop.permute.xlu0 %1489 }
 0x11c   : > { %vm300_vm13 = vcmp.eq.s32.totalorder %v1900_v4, %v256_v15  ;;  %v1492_v42 = vunpack.i.h.bf16 %v1490_v63  ;;  %v1491_v28 = vunpack.i.l.bf16 %v1490_v63 }
 0x11d   : > { %vm492_vm0 = vmor %vm300_vm13, %vm460_vm12 }
 0x11e   : > { %vm525_vm7 = vmor %vm492_vm0, %vm499_vm1  ;;  %vm286_vm0 = vcmp.eq.s32.totalorder %v1900_v4, %v1880_v56 }
 0x11f   : > { %v1138_v54 = vsel %vm525_vm7, 1.0, %v1560_v26 }
 0x120   : > { %v368_v41 = vpop.permute.xlu1 %367 }
 0x121   : > { %vm444_vm15 = vcmp.eq.s32.totalorder %v1900_v4, %v368_v41 }
 0x122   : > { %vm476_vm6 = vmor %vm284_vm3, %vm444_vm15 }
 0x123   : > { %vm509_vm9 = vmor %vm476_vm6, %vm499_vm1 }
 0x124   : > { %v1122_v33 = vsel %vm509_vm9, 1.0, %v1560_v26 }
 0x125   : > { %v1433_v23 = vpop.permute.xlu1 %1432 }
 0x126   : > { %v1435_v37 = vunpack.i.h.bf16 %v1433_v23  ;;  %v1434_v49 = vunpack.i.l.bf16 %v1433_v23 }
 0x128   : > { %v732_v24 = vsel %vm532_vm4, %v1434_v49, %v1120_v27  ;;  %v748_v1 = vsel %vm532_vm4, %v1435_v37, %v1136_v51 }
 0x129   : > { %1241 = vmatmul.mubr.f32.gmra.mrb[6].mxu0 %v732_v24  ;;  %1265 = vmatmul.mubr.f32.gmra.mrb[6].mxu1 %v748_v1 }
 0x12a   : > { %v259_v53 = vpop.permute.xlu1 %258  ;;  %1243 = vmatprep.mubr.f32.mxu0 %v2075_v14  ;;  %1267 = vmatprep.mubr.f32.mxu1 %v749_v30 }
 0x12b   : > { %vm301_vm2 = vcmp.eq.s32.totalorder %v1900_v4, %v259_v53 }
 0x12f   : > { %v419_v22 = vpop.permute.xlu1 %418 }
 0x130   : > { %vm461_vm14 = vcmp.eq.s32.totalorder %v1900_v4, %v419_v22 }
 0x131   : > { %vm493_vm5 = vmor %vm301_vm2, %vm461_vm14 }
 0x132   : > { %vm526_vm8 = vmor %vm493_vm5, %vm499_vm1 }
 0x133   : > { %v1139_v31 = vsel %vm526_vm8, 1.0, %v1560_v26  ;;  %vm449_vm8 = vcmp.eq.s32.totalorder %v1900_v4, %v383_v47 }
 0x134   : > { %v262_v25 = vpop.permute.xlu1 %261  ;;  %v751_v34 = vsel %vm532_vm4, %v1457_v52, %v1139_v31 }
 0x135   : > { %vm302_vm11 = vcmp.eq.s32.totalorder %v1900_v4, %v262_v25 }
 0x136   : > { %vm494_vm14 = vmor %vm302_vm11, %vm462_vm10  ;;  %vm289_vm10 = vcmp.eq.s32.totalorder %v1900_v4, %v1893_v61 }
 0x137   : > { %vm527_vm5 = vmor %vm494_vm14, %vm499_vm1  ;;  %vm288_vm14 = vcmp.eq.s32.totalorder %v1900_v4, %v1886_v58 }
 0x138   : > { %v1140_v56 = vsel %vm527_vm5, 1.0, %v1560_v26 }
 0x139   : > { %v374_v29 = vpop.permute.xlu1 %373 }
 0x13a   : > { %vm446_vm13 = vcmp.eq.s32.totalorder %v1900_v4, %v374_v29 }
 0x13b   : > { %vm478_vm3 = vmor %vm286_vm0, %vm446_vm13 }
 0x13c   : > { %vm511_vm7 = vmor %vm478_vm3, %vm499_vm1 }
 0x13d   : > { %v1124_v5 = vsel %vm511_vm7, 1.0, %v1560_v26  ;;  %vm481_vm13 = vmor %vm289_vm10, %vm449_vm8  ;;  %vm466_vm7 = vcmp.eq.s32.totalorder %v1900_v4, %v434_v7  ;;  %vm290_vm10 = vcmp.eq.s32.totalorder %v1900_v4, %v1890_v60 }
 0x13e   : > { %v1448_v16 = vpop.permute.xlu1 %1447 }
 0x13f   : > { %v1450_v9 = vunpack.i.h.bf16 %v1448_v16  ;;  %v1449_v6 = vunpack.i.l.bf16 %v1448_v16 }
 0x141   : > { %v734_v8 = vsel %vm532_vm4, %v1449_v6, %v1122_v33  ;;  %v750_v11 = vsel %vm532_vm4, %v1450_v9, %v1138_v54 }
 0x142   : > { %1244 = vmatmul.mubr.f32.gmra.mrb[8].mxu0 %v734_v8  ;;  %1268 = vmatmul.mubr.f32.gmra.mrb[8].mxu1 %v750_v11 }
 0x143   : > { %v265_v10 = vpop.permute.xlu1 %264  ;;  %1246 = vmatprep.mubr.f32.mxu0 %v2099_v57  ;;  %1270 = vmatprep.mubr.f32.mxu1 %v751_v34 }
 0x144   : > { %vm303_vm15 = vcmp.eq.s32.totalorder %v1900_v4, %v265_v10 }
 0x148   : > { %v425_v32 = vpop.permute.xlu1 %424 }
 0x149   : > { %vm463_vm12 = vcmp.eq.s32.totalorder %v1900_v4, %v425_v32 }
 0x14a   : > { %vm495_vm2 = vmor %vm303_vm15, %vm463_vm12  ;;  %vm464_vm12 = vcmp.eq.s32.totalorder %v1900_v4, %v428_v40 }
 0x14b   : > { %vm528_vm6 = vmor %vm495_vm2, %vm499_vm1 }
 0x14c   : > { %v1141_v38 = vsel %vm528_vm6, 1.0, %v1560_v26  ;;  %vm2211_vm2 = vmor %vm481_vm13, %vm499_vm1 }
 0x14d   : > { %v268_v35 = vpop.permute.xlu1 %267  ;;  %v753_v48 = vsel %vm532_vm4, %v1472_v55, %v1141_v38  ;;  %v1127_v41 = vsel %vm2211_vm2, 1.0, %v1560_v26 }
 0x14e   : > { %vm304_vm9 = vcmp.eq.s32.totalorder %v1900_v4, %v268_v35 }
 0x14f   : > { %vm496_vm15 = vmor %vm304_vm9, %vm464_vm12 }
 0x150   : > { %vm529_vm5 = vmor %vm496_vm15, %vm499_vm1 }
 0x151   : > { %v1142_v59 = vsel %vm529_vm5, 1.0, %v1560_v26 }
 0x152   : > { %v380_v36 = vpop.permute.xlu1 %379 }
 0x153   : > { %vm448_vm11 = vcmp.eq.s32.totalorder %v1900_v4, %v380_v36 }
 0x154   : > { %vm480_vm0 = vmor %vm288_vm14, %vm448_vm11 }
 0x155   : > { %vm513_vm8 = vmor %vm480_vm0, %vm499_vm1 }
 0x156   : > { %v1126_v2 = vsel %vm513_vm8, 1.0, %v1560_v26 }
 0x157   : > { %v1463_v12 = vpop.permute.xlu1 %1462 }
 0x158   : > { %v1465_v39 = vunpack.i.h.bf16 %v1463_v12  ;;  %v1464_v14 = vunpack.i.l.bf16 %v1463_v12 }
 0x15a   : > { %v736_v43 = vsel %vm532_vm4, %v1464_v14, %v1124_v5  ;;  %v752_v44 = vsel %vm532_vm4, %v1465_v39, %v1140_v56 }
 0x15b   : > { %1247 = vmatmul.mubr.f32.gmra.mrb[10].mxu0 %v736_v43  ;;  %1271 = vmatmul.mubr.f32.gmra.mrb[10].mxu1 %v752_v44 }
 0x15c   : > { %v271_v57 = vpop.permute.xlu1 %270  ;;  %1249 = vmatprep.mubr.f32.mxu0 %v2122_v20  ;;  %1273 = vmatprep.mubr.f32.mxu1 %v753_v48 }
 0x15d   : > { %vm305_vm12 = vcmp.eq.s32.totalorder %v1900_v4, %v271_v57 }
 0x161   : > { %v431_v3 = vpop.permute.xlu1 %430 }
 0x162   : > { %vm465_vm9 = vcmp.eq.s32.totalorder %v1900_v4, %v431_v3 }
 0x163   : > { %vm497_vm14 = vmor %vm305_vm12, %vm465_vm9 }
 0x166   : > { %v274_v50 = vpop.permute.xlu1 %273 }
 0x167   : > { %vm306_vm3 = vcmp.eq.s32.totalorder %v1900_v4, %v274_v50 }
 0x168   : > { %vm498_vm11 = vmor %vm306_vm3, %vm466_vm7 }
 0x169   : > { %vm531_vm15 = vmor %vm498_vm11, %vm499_vm1 }
 0x16a   : > { %vm530_vm3 = vmor %vm497_vm14, %vm499_vm1  ;;  %v1144_v21 = vsel %vm531_vm15, 1.0, %v1560_v26 }
 0x16b   : > { %v386_v61 = vpop.permute.xlu1 %385  ;;  %v1143_v45 = vsel %vm530_vm3, 1.0, %v1560_v26  ;;  %v756_v49 = vsel %vm532_vm4, %v1492_v42, %v1144_v21 }
 0x16c   : > { %vm450_vm6 = vcmp.eq.s32.totalorder %v1900_v4, %v386_v61 }
 0x16d   : > { %vm482_vm13 = vmor %vm290_vm10, %vm450_vm6 }
 0x16e   : > { %vm515_vm0 = vmor %vm482_vm13, %vm499_vm1 }
 0x16f   : > { %v1128_v17 = vsel %vm515_vm0, 1.0, %v1560_v26 }
 0x170   : > { %v1479_v58 = vpop.permute.xlu1 %1478  ;;  %v740_v37 = vsel %vm532_vm4, %v1491_v28, %v1128_v17 }
 0x171   : > { %v1481_v18 = vunpack.i.h.bf16 %v1479_v58  ;;  %v1480_v46 = vunpack.i.l.bf16 %v1479_v58 }
 0x173   : > { %v738_v60 = vsel %vm532_vm4, %v1480_v46, %v1126_v2  ;;  %v754_v19 = vsel %vm532_vm4, %v1481_v18, %v1142_v59 }
 0x174   : > { %v1484_v20 = vpop.permute.xlu1 %1483  ;;  %1250 = vmatmul.mubr.f32.gmra.mrb[12].mxu0 %v738_v60  ;;  %1274 = vmatmul.mubr.f32.gmra.mrb[12].mxu1 %v754_v19 }
 0x175   : > { %v1486_v0 = vunpack.i.h.bf16 %v1484_v20  ;;  %v1485_v15 = vunpack.i.l.bf16 %v1484_v20 }
 0x177   : > { %v739_v23 = vsel %vm532_vm4, %v1485_v15, %v1127_v41  ;;  %v755_v13 = vsel %vm532_vm4, %v1486_v0, %v1143_v45 }
 0x178   : > { %1252 = vmatprep.mubr.f32.mxu0 %v739_v23  ;;  %1276 = vmatprep.mubr.f32.mxu1 %v755_v13 }
 0x179   : > { %1253 = vmatmul.mubr.f32.gmra.mrb[14].mxu0 %v740_v37  ;;  %1277 = vmatmul.mubr.f32.gmra.mrb[14].mxu1 %v756_v49 }
 0x1b4   : > { %v1233_v26 = vpop.f32.mrb[0].mxu0 }
 0x1b5   : > { %999 = vst [vmem:[%s2255_s22 + $0x8] sm:$0xff] %v1233_v26  ;;  %v839_v51 = vpop.f32.mrb[1].mxu0 }
 0x1b6   : > { %998 = vst [vmem:[%s2255_s22] sm:$0xff] %v839_v51 }
 0x1b7   : > { %v1257_v4 = vpop.f32.mrb[0].mxu1 }
 0x1b8   : > { %1015 = vst [vmem:[%s2255_s22 + $0x88] sm:$0xff] %v1257_v4  ;;  %v919_v27 = vpop.f32.mrb[1].mxu1 }
 0x1b9   : > { %1014 = vst [vmem:[%s2255_s22 + $0x80] sm:$0xff] %v919_v27 }
 0x1ca   : > { %v1236_v24 = vpop.f32.mrb[2].mxu0  ;;  %v1260_v1 = vpop.f32.mrb[2].mxu1 }
 0x1cb   : > { %1001 = vst [vmem:[%s2255_s22 + $0x18] sm:$0xff] %v1236_v24  ;;  %1017 = vst [vmem:[%s2255_s22 + $0x98] sm:$0xff] %v1260_v1  ;;  %v849_v30 = vpop.f32.mrb[3].mxu0  ;;  %v929_v53 = vpop.f32.mrb[3].mxu1 }
 0x1cc   : > { %1000 = vst [vmem:[%s2255_s22 + $0x10] sm:$0xff] %v849_v30  ;;  %1016 = vst [vmem:[%s2255_s22 + $0x90] sm:$0xff] %v929_v53 }
 0x1e3   : > { %v1239_v22 = vpop.f32.mrb[4].mxu0  ;;  %v1263_v25 = vpop.f32.mrb[4].mxu1 }
 0x1e4   : > { %1003 = vst [vmem:[%s2255_s22 + $0x28] sm:$0xff] %v1239_v22  ;;  %1019 = vst [vmem:[%s2255_s22 + $0xa8] sm:$0xff] %v1263_v25  ;;  %v859_v29 = vpop.f32.mrb[5].mxu0  ;;  %v939_v16 = vpop.f32.mrb[5].mxu1 }
 0x1e5   : > { %1002 = vst [vmem:[%s2255_s22 + $0x20] sm:$0xff] %v859_v29  ;;  %1018 = vst [vmem:[%s2255_s22 + $0xa0] sm:$0xff] %v939_v16 }
 0x1fc   : > { %v1242_v31 = vpop.f32.mrb[6].mxu0  ;;  %v1266_v9 = vpop.f32.mrb[6].mxu1 }
 0x1fd   : > { %1005 = vst [vmem:[%s2255_s22 + $0x38] sm:$0xff] %v1242_v31  ;;  %1021 = vst [vmem:[%s2255_s22 + $0xb8] sm:$0xff] %v1266_v9  ;;  %v869_v6 = vpop.f32.mrb[7].mxu0  ;;  %v949_v52 = vpop.f32.mrb[7].mxu1 }
 0x1fe   : > { %1004 = vst [vmem:[%s2255_s22 + $0x30] sm:$0xff] %v869_v6  ;;  %1020 = vst [vmem:[%s2255_s22 + $0xb0] sm:$0xff] %v949_v52 }
 0x215   : > { %v1245_v54 = vpop.f32.mrb[8].mxu0  ;;  %v1269_v33 = vpop.f32.mrb[8].mxu1 }
 0x216   : > { %1007 = vst [vmem:[%s2255_s22 + $0x48] sm:$0xff] %v1245_v54  ;;  %1023 = vst [vmem:[%s2255_s22 + $0xc8] sm:$0xff] %v1269_v33  ;;  %v879_v8 = vpop.f32.mrb[9].mxu0  ;;  %v959_v11 = vpop.f32.mrb[9].mxu1 }
 0x217   : > { %1006 = vst [vmem:[%s2255_s22 + $0x40] sm:$0xff] %v879_v8  ;;  %1022 = vst [vmem:[%s2255_s22 + $0xc0] sm:$0xff] %v959_v11 }
 0x22e   : > { %v1248_v34 = vpop.f32.mrb[10].mxu0  ;;  %v1272_v10 = vpop.f32.mrb[10].mxu1 }
 0x22f   : > { %1009 = vst [vmem:[%s2255_s22 + $0x58] sm:$0xff] %v1248_v34  ;;  %1025 = vst [vmem:[%s2255_s22 + $0xd8] sm:$0xff] %v1272_v10  ;;  %v889_v32 = vpop.f32.mrb[11].mxu0  ;;  %v969_v35 = vpop.f32.mrb[11].mxu1 }
 0x230   : > { %1008 = vst [vmem:[%s2255_s22 + $0x50] sm:$0xff] %v889_v32  ;;  %1024 = vst [vmem:[%s2255_s22 + $0xd0] sm:$0xff] %v969_v35 }
 0x247   : > { %v1251_v36 = vpop.f32.mrb[12].mxu0  ;;  %v1275_v12 = vpop.f32.mrb[12].mxu1 }
 0x248   : > { %1011 = vst [vmem:[%s2255_s22 + $0x68] sm:$0xff] %v1251_v36  ;;  %1027 = vst [vmem:[%s2255_s22 + $0xe8] sm:$0xff] %v1275_v12  ;;  %v899_v38 = vpop.f32.mrb[13].mxu0  ;;  %v979_v39 = vpop.f32.mrb[13].mxu1 }
 0x249   : > { %1010 = vst [vmem:[%s2255_s22 + $0x60] sm:$0xff] %v899_v38  ;;  %1026 = vst [vmem:[%s2255_s22 + $0xe0] sm:$0xff] %v979_v39 }
 0x24c   : > { %v1254_v14 = vpop.f32.mrb[14].mxu0  ;;  %v1278_v55 = vpop.f32.mrb[14].mxu1 }
 0x24d   : > { %1013 = vst [vmem:[%s2255_s22 + $0x78] sm:$0xff] %v1254_v14  ;;  %1029 = vst [vmem:[%s2255_s22 + $0xf8] sm:$0xff] %v1278_v55  ;;  %v909_v56 = vpop.f32.mrb[15].mxu0  ;;  %v989_v5 = vpop.f32.mrb[15].mxu1 }
 0x24e   : > { %1012 = vst [vmem:[%s2255_s22 + $0x70] sm:$0xff] %v909_v56  ;;  %1028 = vst [vmem:[%s2255_s22 + $0xf0] sm:$0xff] %v989_v5 }
 0x24f   : > { %1506 = shalt.err (!%p1503_p3)
}
 0x250   : > { %s1507_s5 = scalar_lea.hbm %s2290_s28, 4096  ;;  %s1511_s8 = scalar_lea.hbm %s2343_s2, 8192 }
 0x251   : > { %p1508_p4 = scmp.ne.s32.totalorder %s2290_s28, %s1507_s5  ;;  %p1512_p9 = scmp.lt.u32.totalorder %s2290_s28, %s2343_s2 }
 0x252   : > { %p1513_p10 = scmp.lt.u32.totalorder %s1511_s8, %s1507_s5  ;;  %p1515_p12 = scmp.lt.u32.totalorder %s1507_s5, %s2290_s28 }
 0x253   : > { %p1509_p7 = pnand %p1508_p4, %p1617_p5 }
 0x254   : > { %p1514_p11 = por %p1513_p10, %p1512_p9 }
 0x255   : > { %p1510_p8 = pneg %p1509_p7 }
 0x256   : > { %p1516_p13 = por %p1515_p12, %p1514_p11 }
 0x258   : > { %p1517_p0 = pnand %p1516_p13, %p1510_p8 }
 0x25a   : > { %1520 = shalt.err (!%p1517_p0)
}
 0x25b   : > { %s1562_s17 = smov 128   ;;  %s1563_s25 = smov 8  }
 0x25c   : > { %1327 = dma.vmem_to_hbm [thread:$0]  (%p1617_p5), %s2292_s24, 4096, %s2290_s28, %s2300_s13, %s1562_s17, %s1562_s17, %s1563_s25  }
 0x25d PF: > { %p1333_p1 = scmp.ge.s32.totalorder %s1555_s12, 2  ;;  %s1059_s21 = sand.u32 1, %s1543_s9  }
 0x25e   : > { %s1060_s22 = scalar_lea.sflag [#allocation3], %s1059_s21 }
 0x25f   : > { %p1330_p2 = pnand %p1333_p1, %p1621_p6 }
 0x261   : > { %1538 = dma.done.wait (!%p1330_p2), %s1060_s22, 4096  }
 0x262   : > { %1540 = vsyncadd (!%p1330_p2), %s1060_s22, 4294963200  ;;  %p12_p3 = scmp.ge.s32.totalorder %s1604_s15, 4   ;;  %s2352_s9 = smov %s1547_s10 }
 0x263   : > { %s2353_s10 = smov %s1551_s11  ;;  %s2354_s11 = smov %s1615_s18 }
 0x264   : > { %s2355_s12 = smov %s1604_s15  ;;  %14 = sbr.rel (!%p12_p3) target bundleno = 3 (0x3), region = 63 }
 0x26b   :  { %1065 = vsyncpa [#allocation3], 1 }
 0x26c   :  { %1067 = vsyncpa [#allocation3 + $0x1], 1 }

</bundles_post_ra>
